<compile_context>
chip_gen: v7x
topology: tpu7x:2x2x1
jax: 0.10.0
libtpu: 0.0.40
codegen_flags: <defaults>
</compile_context>

<pallas_src>
import jax
import jax.numpy as jnp
from jax.experimental import pallas as pl
from jax.experimental.pallas import tpu as pltpu

_EPS = 1e-12  # torch.nn.functional.normalize default eps


def _skipgram_partial_kernel(idx_ref, tab_ref, csum_ref, ysum_ref, tn_ref):
    # idx_ref : (tile_l, B) int32 token ids (padded rows hold -1)
    # tab_ref : (V, D) raw embedding table (VMEM-resident; any float dtype)
    # csum_ref: (B, D) f32 output accumulator of sum_l Sn[b, l, :]
    # ysum_ref: (1, D) f32 output accumulator of sum_l (sum_b Sn[b, l, :])^2 per lane
    # tn_ref  : (V, D) f32 scratch, row-normalized table
    step = pl.program_id(0)
    tile_l, n_batch = idx_ref.shape
    vocab = tab_ref.shape[0]

    @pl.when(step == 0)
    def _init():
        t = tab_ref[...].astype(jnp.float32)
        # F.normalize(x, dim=-1): x / max(||x||, eps) == x * rsqrt(max(||x||^2, eps^2))
        ss = jnp.sum(t * t, axis=-1, keepdims=True)
        tn_ref[...] = t * jax.lax.rsqrt(jnp.maximum(ss, _EPS * _EPS))
        csum_ref[...] = jnp.zeros_like(csum_ref)
        ysum_ref[...] = jnp.zeros_like(ysum_ref)

    idx = idx_ref[...]                                                    # (tile_l, B)
    v_ids = jax.lax.broadcasted_iota(jnp.int32, (tile_l, n_batch, vocab), 2)
    onehot = jnp.where(v_ids == idx[:, :, None], 1.0, 0.0).astype(jnp.float32)

    tn = tn_ref[...]                                                      # (V, D)

    # y term: r_l = sum_b Sn[b, l, :] = (sum_b onehot) @ Tn ; accumulate sum_l r_l^2.
    cnt_l = jnp.sum(onehot, axis=1)                                       # (tile_l, V)
    r = jnp.dot(cnt_l, tn, preferred_element_type=jnp.float32)            # (tile_l, D)
    ysum_ref[...] += jnp.sum(r * r, axis=0, keepdims=True)                # (1, D)

    # x term: csum_b = sum_l Sn[b, l, :] = (sum_l onehot) @ Tn.
    cnt_b = jnp.sum(onehot, axis=0)                                       # (B, V)
    csum_ref[...] += jnp.dot(cnt_b, tn, preferred_element_type=jnp.float32)


def _round_up(x, m):
    return ((x + m - 1) // m) * m


def _vmem_capacity_bytes():
    try:
        return int(pltpu.get_tpu_info().vmem_capacity_bytes)
    except Exception:
        return 64 * 1024 * 1024  # v7x per-core floor; conservative everywhere


def _plan_tiling(n_batch, n_seq, vocab, emb_dim, table_itemsize, vmem_cap):
    # Resident across the grid: double-buffered raw table + normalized-table
    # scratch + the two (small) accumulator output blocks.
    resident = (2 * vocab * emb_dim * table_itemsize
                + vocab * emb_dim * 4
                + 2 * (n_batch + 1) * emb_dim * 4)
    # Per-L-row working set (f32): one-hot (B, V) + cnt_l (V) + r (D) rows,
    # plus the double-buffered int32 index input.
    per_row = (n_batch * vocab + vocab + emb_dim) * 4 + 2 * n_batch * 4
    budget = max(int(0.4 * vmem_cap) - resident, 1 << 20)
    tile_l = max(8, min(_round_up(n_seq, 8), (budget // per_row) // 8 * 8))
    vmem_limit = resident + 3 * per_row * tile_l + (8 << 20)
    vmem_limit = int(min(max(vmem_limit, 32 << 20), int(0.9 * vmem_cap)))
    return int(tile_l), vmem_limit


def transpose_trick_skipgram_loss(emb_table, batch, *, tile_l=None):
    """Forward pass of TransposeTrickSkipGram. Returns a scalar float32 loss."""
    vocab, emb_dim = emb_table.shape
    n_batch, n_seq = batch.shape
    table_itemsize = jnp.dtype(emb_table.dtype).itemsize

    vmem_cap = _vmem_capacity_bytes()
    if 3 * vocab * emb_dim * table_itemsize > int(0.6 * vmem_cap):
        # TODO(synk): large-vocab path (row-gather via data-dependent index_map).
        raise NotImplementedError("embedding table too large for VMEM-resident gather")

    auto_tile, vmem_limit = _plan_tiling(n_batch, n_seq, vocab, emb_dim,
                                         table_itemsize, vmem_cap)
    if tile_l is None:
        tile_l = auto_tile
    tile_l = max(8, _round_up(int(tile_l), 8))

    # Indices as (L, B): lane dim is the full batch dim, sublane dim is the
    # tiled sequence dim.  Pad ragged L with -1 (matches no vocab id).
    idx = jnp.asarray(batch, jnp.int32).T                                 # (L, B)
    n_seq_pad = _round_up(n_seq, tile_l)
    if n_seq_pad != n_seq:
        idx = jnp.pad(idx, ((0, n_seq_pad - n_seq), (0, 0)), constant_values=-1)
    num_tiles = n_seq_pad // tile_l

    csum, ysum = pl.pallas_call(
        _skipgram_partial_kernel,
        out_shape=(jax.ShapeDtypeStruct((n_batch, emb_dim), jnp.float32),
                   jax.ShapeDtypeStruct((1, emb_dim), jnp.float32)),
        grid=(num_tiles,),
        in_specs=[pl.BlockSpec((tile_l, n_batch), lambda i: (i, 0)),
                  pl.BlockSpec((vocab, emb_dim), lambda i: (0, 0))],
        out_specs=(pl.BlockSpec((n_batch, emb_dim), lambda i: (0, 0)),
                   pl.BlockSpec((1, emb_dim), lambda i: (0, 0))),
        scratch_shapes=[pltpu.VMEM((vocab, emb_dim), jnp.float32)],
        compiler_params=pltpu.CompilerParams(
            dimension_semantics=("arbitrary",),   # L axis carries the accumulators
            vmem_limit_bytes=vmem_limit),
        cost_estimate=pl.CostEstimate(
            flops=2 * n_seq_pad * vocab * emb_dim
                  + 2 * num_tiles * n_batch * vocab * emb_dim,
            transcendentals=vocab,
            bytes_accessed=(vocab * emb_dim * table_itemsize
                            + idx.size * 4 + (n_batch + 1) * emb_dim * 4)),
    )(idx, emb_table)

    # Scalar epilogue (a handful of flops) in plain JAX:
    #   x = sum_b [ mean_{i,j} (Sn Sn^T)_b - 1 ] = (1/L^2) * sum ||csum_b||^2 - B
    #   y = sum_l   mean_{b,c} (Sn^T Sn)_l       = (1/B^2) * sum_l ||r_l||^2
    x = jnp.sum(csum * csum) * (1.0 / float(n_seq * n_seq)) - float(n_batch)
    y = jnp.sum(ysum) * (1.0 / float(n_batch * n_batch))
    return -x + y


def _reference_loss(emb_table, batch):
    # Pure-JAX reference mirroring the PyTorch forward (einsum Gram form).
    s = emb_table[batch].astype(jnp.float32)
    sn = s / jnp.maximum(jnp.linalg.norm(s, axis=2, keepdims=True), _EPS)
    x = jnp.sum(jnp.mean(jnp.einsum('bid,bjd->bij', sn, sn) - 1.0, axis=(1, 2)))
    st = jnp.swapaxes(sn, 0, 1)
    y = jnp.sum(jnp.mean(jnp.einsum('lbd,lcd->lbc', st, st), axis=(1, 2)))
    return -x + y


if __name__ == "__main__":
    vocab_size, embedding_dim = 64, 128
    batch_size, seq_len = 4, 8

    key = jax.random.PRNGKey(0)
    k_emb, k_tok = jax.random.split(key)
    # nn.Embedding default init ~ N(0, 1); initialized deterministically here.
    emb_table = jax.random.normal(k_emb, (vocab_size, embedding_dim), dtype=jnp.float32)
    batch = jax.random.randint(k_tok, (batch_size, seq_len), 0, vocab_size,
                               dtype=jnp.int32)

    loss = transpose_trick_skipgram_loss(emb_table, batch)
    loss = jax.block_until_ready(loss)

    ref = _reference_loss(emb_table, batch)
    assert jnp.allclose(loss, ref, rtol=1e-4, atol=1e-4), (loss, ref)
    print("KERNEL_OK")
</pallas_src>

<mosaic_0001>
module attributes {stable_mosaic.version = 11 : i64} {
  func.func @_skipgram_partial_kernel(%arg0: i32, %arg1: memref<8x4xi32, #tpu.memory_space<vmem>>, %arg2: memref<64x128xf32, #tpu.memory_space<vmem>>, %arg3: memref<4x128xf32, #tpu.memory_space<vmem>>, %arg4: memref<1x128xf32, #tpu.memory_space<vmem>>, %arg5: memref<64x128xf32, #tpu.memory_space<vmem>>) attributes {dimension_semantics = [#tpu.dimension_semantics<arbitrary>], iteration_bounds = array<i64: 1>, scalar_prefetch = 0 : i64, scratch_operands = 1 : i64, tpu.core_type = #tpu.core_type<tc>, window_params = [{transform_indices = @transform_0, window_bounds = array<i64: 8, 4>}, {pipeline_mode = #tpu.pipeline_mode<synchronous>, transform_indices = @transform_1, window_bounds = array<i64: 64, 128>}, {pipeline_mode = #tpu.pipeline_mode<synchronous>, transform_indices = @transform_2, window_bounds = array<i64: 4, 128>}, {pipeline_mode = #tpu.pipeline_mode<synchronous>, transform_indices = @transform_3, window_bounds = array<i64: 1, 128>}]} {
    %c0_i32 = arith.constant 0 : i32
    %0 = arith.cmpi eq, %arg0, %c0_i32 : i32
    %1 = arith.extui %0 : i1 to i32
    %c0_i32_0 = arith.constant 0 : i32
    %2 = arith.cmpi ne, %1, %c0_i32_0 : i32
    scf.if %2 {
      %c0_18 = arith.constant 0 : index
      %c0_19 = arith.constant 0 : index
      %25 = vector.load %arg2[%c0_18, %c0_19] : memref<64x128xf32, #tpu.memory_space<vmem>>, vector<64x128xf32>
      %26 = arith.mulf %25, %25 : vector<64x128xf32>
      %cst_20 = arith.constant dense<0.000000e+00> : vector<64xf32>
      %27 = vector.multi_reduction <add>, %26, %cst_20 [1] : vector<64x128xf32> to vector<64xf32>
      %28 = vector.shape_cast %27 : vector<64xf32> to vector<64x1xf32>
      %cst_21 = arith.constant 1.000000e-24 : f32
      %29 = vector.broadcast %cst_21 : f32 to vector<64x1xf32>
      %30 = arith.maximumf %28, %29 : vector<64x1xf32>
      %31 = math.rsqrt %30 : vector<64x1xf32>
      %32 = vector.broadcast %31 : vector<64x1xf32> to vector<64x128xf32>
      %33 = arith.mulf %25, %32 : vector<64x128xf32>
      %c0_22 = arith.constant 0 : index
      %c0_23 = arith.constant 0 : index
      %34 = vector.load %arg5[%c0_22, %c0_23] : memref<64x128xf32, #tpu.memory_space<vmem>>, vector<64x128xf32>
      tpu.vector_store %arg5[%c0_22, %c0_23], %33 {strides = array<i32>} : memref<64x128xf32, #tpu.memory_space<vmem>>, vector<64x128xf32>,
      %cst_24 = arith.constant 0.000000e+00 : f32
      %35 = vector.broadcast %cst_24 : f32 to vector<4x128xf32>
      %c0_25 = arith.constant 0 : index
      %c0_26 = arith.constant 0 : index
      %36 = vector.load %arg3[%c0_25, %c0_26] : memref<4x128xf32, #tpu.memory_space<vmem>>, vector<4x128xf32>
      tpu.vector_store %arg3[%c0_25, %c0_26], %35 {strides = array<i32>} : memref<4x128xf32, #tpu.memory_space<vmem>>, vector<4x128xf32>,
      %cst_27 = arith.constant 0.000000e+00 : f32
      %37 = vector.broadcast %cst_27 : f32 to vector<1x128xf32>
      %c0_28 = arith.constant 0 : index
      %c0_29 = arith.constant 0 : index
      %38 = vector.load %arg4[%c0_28, %c0_29] : memref<1x128xf32, #tpu.memory_space<vmem>>, vector<1x128xf32>
      tpu.vector_store %arg4[%c0_28, %c0_29], %37 {strides = array<i32>} : memref<1x128xf32, #tpu.memory_space<vmem>>, vector<1x128xf32>,
    } else {
    }
    %c0 = arith.constant 0 : index
    %c0_1 = arith.constant 0 : index
    %3 = vector.load %arg1[%c0, %c0_1] : memref<8x4xi32, #tpu.memory_space<vmem>>, vector<8x4xi32>
    %4 = tpu.iota {dimensions = array<i32: 2>} : vector<8x4x64xi32>
    %5 = vector.shape_cast %3 : vector<8x4xi32> to vector<8x4x1xi32>
    %6 = vector.broadcast %5 : vector<8x4x1xi32> to vector<8x4x64xi32>
    %7 = arith.cmpi eq, %4, %6 : vector<8x4x64xi32>
    %cst = arith.constant 1.000000e+00 : f32
    %cst_2 = arith.constant 0.000000e+00 : f32
    %8 = vector.broadcast %cst : f32 to vector<8x4x64xf32>
    %9 = vector.broadcast %cst_2 : f32 to vector<8x4x64xf32>
    %10 = arith.select %7, %8, %9 : vector<8x4x64xi1>, vector<8x4x64xf32>
    %c0_3 = arith.constant 0 : index
    %c0_4 = arith.constant 0 : index
    %11 = vector.load %arg5[%c0_3, %c0_4] : memref<64x128xf32, #tpu.memory_space<vmem>>, vector<64x128xf32>
    %cst_5 = arith.constant dense<0.000000e+00> : vector<8x64xf32>
    %12 = vector.multi_reduction <add>, %10, %cst_5 [1] : vector<8x4x64xf32> to vector<8x64xf32>
    %cst_6 = arith.constant dense<0.000000e+00> : vector<8x128xf32>
    %13 = tpu.matmul %12, %11, %cst_6 {dimension_numbers = #tpu.dot_dimension_numbers<[1], [0], [0], [1], [0, 0, 1, 1], [], []>} : vector<8x64xf32>, vector<64x128xf32>, vector<8x128xf32> -> vector<8x128xf32>
    %c0_7 = arith.constant 0 : index
    %c0_8 = arith.constant 0 : index
    %14 = vector.load %arg4[%c0_7, %c0_8] : memref<1x128xf32, #tpu.memory_space<vmem>>, vector<1x128xf32>
    %15 = arith.mulf %13, %13 : vector<8x128xf32>
    %cst_9 = arith.constant dense<0.000000e+00> : vector<128xf32>
    %16 = vector.multi_reduction <add>, %15, %cst_9 [0] : vector<8x128xf32> to vector<128xf32>
    %17 = vector.shape_cast %16 : vector<128xf32> to vector<1x128xf32>
    %18 = arith.addf %14, %17 : vector<1x128xf32>
    %c0_10 = arith.constant 0 : index
    %c0_11 = arith.constant 0 : index
    %19 = vector.load %arg4[%c0_10, %c0_11] : memref<1x128xf32, #tpu.memory_space<vmem>>, vector<1x128xf32>
    tpu.vector_store %arg4[%c0_10, %c0_11], %18 {strides = array<i32>} : memref<1x128xf32, #tpu.memory_space<vmem>>, vector<1x128xf32>,
    %cst_12 = arith.constant dense<0.000000e+00> : vector<4x64xf32>
    %20 = vector.multi_reduction <add>, %10, %cst_12 [0] : vector<8x4x64xf32> to vector<4x64xf32>
    %c0_13 = arith.constant 0 : index
    %c0_14 = arith.constant 0 : index
    %21 = vector.load %arg3[%c0_13, %c0_14] : memref<4x128xf32, #tpu.memory_space<vmem>>, vector<4x128xf32>
    %cst_15 = arith.constant dense<0.000000e+00> : vector<4x128xf32>
    %22 = tpu.matmul %20, %11, %cst_15 {dimension_numbers = #tpu.dot_dimension_numbers<[1], [0], [0], [1], [0, 0, 1, 1], [], []>} : vector<4x64xf32>, vector<64x128xf32>, vector<4x128xf32> -> vector<4x128xf32>
    %23 = arith.addf %21, %22 : vector<4x128xf32>
    %c0_16 = arith.constant 0 : index
    %c0_17 = arith.constant 0 : index
    %24 = vector.load %arg3[%c0_16, %c0_17] : memref<4x128xf32, #tpu.memory_space<vmem>>, vector<4x128xf32>
    tpu.vector_store %arg3[%c0_16, %c0_17], %23 {strides = array<i32>} : memref<4x128xf32, #tpu.memory_space<vmem>>, vector<4x128xf32>,
    return
  }
  func.func @transform_0(%arg0: i32) -> (i32, i32) {
    %c0_i32 = arith.constant 0 : i32
    %c0_i32_0 = arith.constant 0 : i32
    return %arg0, %c0_i32 : i32, i32
  }
  func.func @transform_1(%arg0: i32) -> (i32, i32) {
    %c0_i32 = arith.constant 0 : i32
    %c0_i32_0 = arith.constant 0 : i32
    %c0_i32_1 = arith.constant 0 : i32
    return %c0_i32, %c0_i32_0 : i32, i32
  }
  func.func @transform_2(%arg0: i32) -> (i32, i32) {
    %c0_i32 = arith.constant 0 : i32
    %c0_i32_0 = arith.constant 0 : i32
    %c0_i32_1 = arith.constant 0 : i32
    return %c0_i32, %c0_i32_0 : i32, i32
  }
  func.func @transform_3(%arg0: i32) -> (i32, i32) {
    %c0_i32 = arith.constant 0 : i32
    %c0_i32_0 = arith.constant 0 : i32
    %c0_i32_1 = arith.constant 0 : i32
    return %c0_i32, %c0_i32_0 : i32, i32
  }
}

</mosaic_0001>

<bundles_post_ra>
// kernel: tpu_custom_call.1
= control target key start
LH: loop header
LB: loop body
LE: loop exit
PB: predicated region body
PF: predicated region fallthrough
CT: control target
= control target key end

     0   :  { %9 = vsyncpa [#allocation4], 0  ;;  %s783_s0 = inlined_call_operand.vmem [shape: s32[8,4], index: 0, kind: input, shape index: {}]   ;;  %s784_s1 = inlined_call_operand.hbm [shape: f32[64,128], index: 1, kind: input, shape index: {}]   ;;  %s785_s2 = inlined_call_operand.hbm [shape: f32[4,128], index: 2, kind: output, shape index: {0}]   ;;  %s786_s3 = inlined_call_operand.hbm [shape: f32[1,128], index: 3, kind: output, shape index: {1}]  }
   0x1   :  { %10 = vsyncpa [#allocation5], 0 }
   0x2   :  { %11 = vsyncpa [#allocation8], 0  ;;  %s634_s12 = smov [#allocation3]   ;;  %s562_s16 = scalar_lea.hbm %s784_s1, 1024 }
   0x3   :  { %s19_s13 = sshll.u32 %s634_s12, 4  ;;  %p563_p0 = scmp.ne.s32.totalorder %s784_s1, %s562_s16  ;;  %s20_s13 = int_to_ptr.vmem [resolvable:$true] %s19_s13 }
   0x4   :  { %p566_p1 = scmp.lt.u32.totalorder %s562_s16, %s784_s1 }
   0x6   :  { %p568_p2 = pnand %p566_p1, %p563_p0 }
   0x8   :  { %571 = shalt.err (!%p568_p2)
}
   0x9   :  { %s572_s21 = scalar_lea.vmem %s20_s13, 1024  ;;  %p577_p4 = scmp.lt.s32.totalorder %s20_s13, %s20_s13 }
   0xa   :  { %p573_p3 = scmp.ne.s32.totalorder %s20_s13, %s572_s21  ;;  %p578_p5 = scmp.lt.s32.totalorder %s572_s21, %s572_s21 }
   0xc   :  { %p579_p6 = por %p578_p5, %p577_p4 }
   0xe   :  { %p580_p7 = pnand %p579_p6, %p573_p3 }
  0x10   :  { %583 = shalt.err (!%p580_p7)
}
  0x11   :  { %s635_s22 = smov 128   ;;  %s636_s23 = smov 8  }
  0x12   :  { %25 = dma.hbm_to_vmem [thread:$0]  %s784_s1, 1024, %s20_s13, [#allocation4], %s635_s22, %s635_s22, %s636_s23  }
  0x13   :  { %628 = dma.done.wait [#allocation4], 1024  }
  0x14   :  { %629 = vsyncadd [#allocation4], 4294966272  ;;  %v674_v0 = vld [vmem:[#allocation3 + $0x10] sm:$0xff]  ;;  %v676_v1 = vld [vmem:[#allocation3] sm:$0xff]  ;;  %v100_v16 = vlaneseq  ;;  %v637_v27 = vmov 0.0   ;;  %v638_v32 = vmov 0.0|0.0  }
  0x15   :  { %v678_v2 = vld [vmem:[#allocation3 + $0x18] sm:$0xff]  ;;  %v43_v3 = vmul.f32 %v674_v0, %v674_v0  ;;  %v41_v4 = vmul.f32 %v676_v1, %v676_v1  ;;  %v684_v5 = vld [vmem:[#allocation3 + $0x8] sm:$0xff]  ;;  %v692_v9 = vld [vmem:[#allocation3 + $0x20] sm:$0xff]  ;;  %97 = vst [vmem:[#allocation6] sm:$0xf] %v637_v27  ;;  %514 = vmatprep.subr.bf16.mxu0 %v638_v32  ;;  %526 = vmatprep.subr.bf16.mxu1 %v638_v32  ;;  %vm639_vm0 = vmmov 0  }
  0x16   :  { %v44_v6 = vmul.f32 %v678_v2, %v678_v2  ;;  %v42_v7 = vmul.f32 %v684_v5, %v684_v5  ;;  %v690_v8 = vld [vmem:[#allocation3 + $0x28] sm:$0xff]  ;;  %v45_v11 = vmul.f32 %v692_v9, %v692_v9  ;;  %v698_v12 = vld [vmem:[#allocation3 + $0x38] sm:$0xff]  ;;  %v700_v13 = vld [vmem:[#allocation3 + $0x30] sm:$0xff]  ;;  %v103_v17 = vshrl.u32 %v100_v16, 7  ;;  %98 = vst [vmem:[#allocation7] sm:$0x1] %v637_v27  ;;  %511 = vmatprep.mubr.msk.f32.mxu1 %vm639_vm0, %v637_v27 }
  0x17   :  { %53 = vadd.xlane.f32.xlu1 %v43_v3  ;;  %49 = vadd.xlane.f32.xlu0 %v41_v4  ;;  %v46_v10 = vmul.f32 %v690_v8, %v690_v8  ;;  %v48_v14 = vmul.f32 %v698_v12, %v698_v12  ;;  %v47_v15 = vmul.f32 %v700_v13, %v700_v13  ;;  %v99_v19 = vld [vmem:[%s783_s0] sm:$0xff]  ;;  %v715_v51 = vand.u32 127, %v100_v16  ;;  %s640_s0 = smov [#allocation6]  }
  0x18   :  { %v111_v18 = vsub.s32 1, %v103_v17  ;;  %v118_v21 = vsub.s32 2, %v103_v17  ;;  %v104_v22 = vsub.s32 0, %v103_v17  ;;  %v125_v24 = vsub.s32 3, %v103_v17  ;;  %492 = vmatprep.mubr.msk.f32.mxu0 %vm639_vm0, %v637_v27  ;;  %s433_s27 = sshll.u32 %s640_s0, 4  ;;  %s434_s27 = int_to_ptr.vmem [resolvable:$true] %s433_s27 }
  0x19   :  { %v132_v26 = vsub.s32 4, %v103_v17  ;;  %v139_v29 = vsub.s32 5, %v103_v17  ;;  %v146_v31 = vsub.s32 6, %v103_v17  ;;  %v153_v34 = vsub.s32 7, %v103_v17  ;;  %s584_s28 = scalar_lea.vmem %s434_s27, 64  ;;  %p589_p9 = scmp.lt.s32.totalorder %s434_s27, %s434_s27 }
  0x1a   :  { %v112_v20 = vrot.slane %v99_v19, %v111_v18  ;;  %v119_v23 = vrot.slane %v99_v19, %v118_v21  ;;  %v105_v25 = vrot.slane %v99_v19, %v104_v22  ;;  %v126_v28 = vrot.slane %v99_v19, %v125_v24  ;;  %p585_p8 = scmp.ne.s32.totalorder %s434_s27, %s584_s28  ;;  %p590_p10 = scmp.lt.s32.totalorder %s584_s28, %s584_s28 }
  0x1b   :  { %55 = vadd.xlane.f32.xlu1 %v44_v6  ;;  %51 = vadd.xlane.f32.xlu0 %v42_v7  ;;  %v133_v30 = vrot.slane %v99_v19, %v132_v26  ;;  %v140_v33 = vrot.slane %v99_v19, %v139_v29  ;;  %v147_v35 = vrot.slane %v99_v19, %v146_v31  ;;  %vm182_vm1 = vcmask 519168  }
  0x1c   :  { %v154_v36 = vrot.slane %v99_v19, %v153_v34  ;;  %vm247_vm8 = vcmask 1041409   ;;  %vm249_vm10 = vcmask 1042434   ;;  %vm251_vm12 = vcmask 1043459   ;;  %p591_p11 = por %p590_p10, %p589_p9 }
  0x1d   :  { %vm261_vm13 = vcmask 523264   ;;  %vm253_vm14 = vcmask 1044484   ;;  %vm255_vm15 = vcmask 1045509   ;;  %vm257_vm0 = vcmask 1046534  }
  0x1e   :  { %p592_p12 = pnand %p591_p11, %p585_p8 }
  0x1f   :  { %59 = vadd.xlane.f32.xlu1 %v46_v10  ;;  %57 = vadd.xlane.f32.xlu0 %v45_v11 }
  0x23   :  { %63 = vadd.xlane.f32.xlu1 %v48_v14  ;;  %61 = vadd.xlane.f32.xlu0 %v47_v15 }
  0x34   :  { %114 = vbcast.lane.b32.xlu1 %v112_v20, 256 }
  0x38   :  { %121 = vbcast.lane.b32.xlu1 %v119_v23, 256 }
  0x39   :  { %107 = vbcast.lane.b32.xlu0 %v105_v25, 256 }
  0x3c   :  { %128 = vbcast.lane.b32.xlu1 %v126_v28, 256 }
  0x3d   :  { %135 = vbcast.lane.b32.xlu0 %v133_v30, 256 }
  0x40   :  { %142 = vbcast.lane.b32.xlu1 %v140_v33, 256 }
  0x41   :  { %149 = vbcast.lane.b32.xlu0 %v147_v35, 256 }
  0x44   :  { %156 = vbcast.lane.b32.xlu1 %v154_v36, 256 }
  0xa4   :  { %v54_v37 = vpop.xlane.xlu1 %53  ;;  %v50_v38 = vpop.xlane.xlu0 %49 }
  0xa5   :  { %v65_v39 = vmax.f32 %v50_v38, 1e-24  ;;  %v67_v40 = vmax.f32 %v54_v37, 1e-24 }
  0xa7   :  { %546 = vrsqrt.f32 %v65_v39 }
  0xa8   :  { %v56_v41 = vpop.xlane.xlu1 %55  ;;  %v52_v42 = vpop.xlane.xlu0 %51  ;;  %548 = vrsqrt.f32 %v67_v40 }
  0xa9   :  { %v68_v43 = vmax.f32 %v56_v41, 1e-24  ;;  %v66_v44 = vmax.f32 %v52_v42, 1e-24 }
  0xab   :  { %550 = vrsqrt.f32 %v68_v43 }
  0xac   :  { %552 = vrsqrt.f32 %v66_v44  ;;  %v60_v45 = vpop.xlane.xlu1 %59  ;;  %v58_v46 = vpop.xlane.xlu0 %57 }
  0xad   :  { %v70_v47 = vmax.f32 %v60_v45, 1e-24  ;;  %v69_v48 = vmax.f32 %v58_v46, 1e-24 }
  0xaf   :  { %554 = vrsqrt.f32 %v70_v47 }
  0xb0   :  { %556 = vrsqrt.f32 %v69_v48  ;;  %v64_v49 = vpop.xlane.xlu1 %63  ;;  %v62_v50 = vpop.xlane.xlu0 %61 }
  0xb1   :  { %v547_v52 = vpop.eup %546  ;;  %v71_v53 = vmax.f32 %v62_v50, 1e-24  ;;  %v72_v55 = vmax.f32 %v64_v49, 1e-24 }
  0xb2   :  { %v549_v54 = vpop.eup %548  ;;  %v81_v59 = vmul.f32 %v547_v52, %v676_v1 }
  0xb3   :  { %558 = vrsqrt.f32 %v71_v53  ;;  %v83_v14 = vmul.f32 %v549_v54, %v674_v0 }
  0xb4   :  { %v115_v56 = vpop.permute.xlu1 %114  ;;  %v108_v57 = vpop.permute.xlu0 %107  ;;  %560 = vrsqrt.f32 %v72_v55 }
  0xb5   :  { %v551_v58 = vpop.eup %550  ;;  %vm159_vm2 = vcmp.eq.s32.totalorder %v715_v51, %v115_v56  ;;  %vm158_vm3 = vcmp.eq.s32.totalorder %v715_v51, %v108_v57 }
  0xb6   :  { %v553_v60 = vpop.eup %552  ;;  %v167_v61 = vsel %vm159_vm2, 1.0, %v637_v27  ;;  %v166_v62 = vsel %vm158_vm3, 1.0, %v637_v27  ;;  %v84_v16 = vmul.f32 %v551_v58, %v678_v2 }
  0xb7   :  { %v190_v63 = vsel %vm182_vm1, %v167_v61, 0.0  ;;  %v183_v3 = vsel %vm182_vm1, %v166_v62, 0.0  ;;  %v82_v4 = vmul.f32 %v553_v60, %v684_v5 }
  0xb8   :  { %v191_v6 = vrot.slane %v190_v63, 4  ;;  %v184_v7 = vrot.slane %v183_v3, 4  ;;  %v122_v10 = vpop.permute.xlu1 %121  ;;  %v136_v11 = vpop.permute.xlu0 %135  ;;  %v344_v21 = vadd.f32 %v190_v63, %v183_v3  ;;  %v518_v31 = vpack.c.bf16 %v84_v16, %v83_v14 }
  0xb9   :  { %v555_v1 = vpop.eup %554  ;;  %vm160_vm4 = vcmp.eq.s32.totalorder %v715_v51, %v122_v10  ;;  %vm162_vm5 = vcmp.eq.s32.totalorder %v715_v51, %v136_v11  ;;  %v515_v15 = vpack.c.bf16 %v82_v4, %v81_v59 }
  0xba   :  { %v557_v17 = vpop.eup %556  ;;  %v192_v18 = vadd.f32 %v191_v6, %v190_v63  ;;  %v185_v19 = vadd.f32 %v184_v7, %v183_v3  ;;  %v168_v5 = vsel %vm160_vm4, 1.0, %v637_v27  ;;  %v170_v20 = vsel %vm162_vm5, 1.0, %v637_v27 }
  0xbb   :  { %v197_v22 = vsel %vm182_vm1, %v168_v5, 0.0  ;;  %v211_v0 = vsel %vm182_vm1, %v170_v20, 0.0  ;;  %516 = vmatpush3.bf16.msra.mxu0 %v515_v15  ;;  %528 = vmatpush3.bf16.msra.mxu1 %v515_v15  ;;  %v85_v23 = vmul.f32 %v557_v17, %v692_v9  ;;  %v86_v29 = vmul.f32 %v555_v1, %v690_v8 }
  0xbc   :  { %v193_v24 = vrot.slane %v192_v18, 2  ;;  %v186_v25 = vrot.slane %v185_v19, 2  ;;  %v198_v26 = vrot.slane %v197_v22, 4  ;;  %v129_v2 = vpop.permute.xlu1 %128  ;;  %517 = vmatprep.subr.bf16.mxu0 %v638_v32  ;;  %529 = vmatprep.subr.bf16.mxu1 %v638_v32  ;;  %v150_v28 = vpop.permute.xlu0 %149  ;;  %v212_v30 = vrot.slane %v211_v0, 4 }
  0xbd   :  { %vm161_vm6 = vcmp.eq.s32.totalorder %v715_v51, %v129_v2  ;;  %vm164_vm7 = vcmp.eq.s32.totalorder %v715_v51, %v150_v28  ;;  %v345_v9 = vadd.f32 %v344_v21, %v197_v22  ;;  %v521_v42 = vpack.c.bf16 %v86_v29, %v85_v23  ;;  %v559_v43 = vpop.eup %558 }
  0xbe   :  { %v194_v33 = vadd.f32 %v193_v24, %v192_v18  ;;  %v199_v34 = vadd.f32 %v198_v26, %v197_v22  ;;  %v169_v35 = vsel %vm161_vm6, 1.0, %v637_v27  ;;  %v187_v36 = vadd.f32 %v186_v25, %v185_v19  ;;  %v561_v47 = vpop.eup %560 }
  0xbf   :  { %v213_v37 = vadd.f32 %v212_v30, %v211_v0  ;;  %v204_v38 = vsel %vm182_vm1, %v169_v35, 0.0  ;;  %v172_v39 = vsel %vm164_vm7, 1.0, %v637_v27  ;;  %519 = vmatpush3.bf16.msra.mxu0 %v518_v31  ;;  %531 = vmatpush3.bf16.msra.mxu1 %v518_v31  ;;  %v87_v60 = vmul.f32 %v559_v43, %v700_v13 }
  0xc0   :  { %v200_v8 = vrot.slane %v199_v34, 2  ;;  %v205_v40 = vrot.slane %v204_v38, 4  ;;  %v143_v41 = vpop.permute.xlu1 %142  ;;  %520 = vmatprep.subr.bf16.mxu0 %v638_v32  ;;  %532 = vmatprep.subr.bf16.mxu1 %v638_v32  ;;  %v195_v44 = vrot.slane %v194_v33, 1  ;;  %v346_v45 = vadd.f32 %v345_v9, %v204_v38 }
  0xc1   :  { %v225_v46 = vsel %vm182_vm1, %v172_v39, 0.0  ;;  %vm163_vm9 = vcmp.eq.s32.totalorder %v715_v51, %v143_v41  ;;  %v214_v49 = vrot.slane %v213_v37, 2  ;;  %v188_v52 = vrot.slane %v187_v36, 1 }
  0xc2   :  { %v201_v48 = vadd.f32 %v200_v8, %v199_v34  ;;  %v206_v50 = vadd.f32 %v205_v40, %v204_v38  ;;  %v226_v53 = vrot.slane %v225_v46, 4  ;;  %v171_v54 = vsel %vm163_vm9, 1.0, %v637_v27 }
  0xc3   :  { %v347_v55 = vadd.f32 %v346_v45, %v211_v0  ;;  %522 = vmatpush3.bf16.msra.mxu0 %v521_v42  ;;  %534 = vmatpush3.bf16.msra.mxu1 %v521_v42  ;;  %v218_v58 = vsel %vm182_vm1, %v171_v54, 0.0  ;;  %v196_v61 = vadd.f32 %v195_v44, %v194_v33  ;;  %v215_v4 = vadd.f32 %v214_v49, %v213_v37  ;;  %v351_v37 = vld [vmem:[#allocation6] sm:$0xf] }
  0xc4   :  { %v202_v56 = vrot.slane %v201_v48, 1  ;;  %v207_v57 = vrot.slane %v206_v50, 2  ;;  %v157_v59 = vpop.permute.xlu1 %156  ;;  %523 = vmatprep.subr.bf16.mxu0 %v638_v32  ;;  %535 = vmatprep.subr.bf16.mxu1 %v638_v32  ;;  %v227_v62 = vadd.f32 %v226_v53, %v225_v46  ;;  %v219_v63 = vrot.slane %v218_v58, 4 }
  0xc5   :  { %v348_v3 = vadd.f32 %v347_v55, %v218_v58  ;;  %vm165_vm11 = vcmp.eq.s32.totalorder %v715_v51, %v157_v59  ;;  %v88_v7 = vmul.f32 %v561_v47, %v698_v12  ;;  %v189_v10 = vadd.f32 %v188_v52, %v187_v36 }
  0xc6   :  { %v208_v6 = vadd.f32 %v207_v57, %v206_v50  ;;  %v228_v11 = vrot.slane %v227_v62, 2  ;;  %v220_v14 = vadd.f32 %v219_v63, %v218_v58  ;;  %v173_v1 = vsel %vm165_vm11, 1.0, %v637_v27 }
  0xc7   :  { %v203_v15 = vadd.f32 %v202_v56, %v201_v48  ;;  %v232_v32 = vsel %vm182_vm1, %v173_v1, 0.0  ;;  %v349_v13 = vadd.f32 %v348_v3, %v225_v46  ;;  %v524_v19 = vpack.c.bf16 %v88_v7, %v87_v60 }
  0xc8   :  { %v209_v16 = vrot.slane %v208_v6, 1  ;;  %v221_v17 = vrot.slane %v220_v14, 2  ;;  %v233_v18 = vrot.slane %v232_v32, 4  ;;  %v216_v5 = vrot.slane %v215_v4, 1 }
  0xc9   :  { %v229_v21 = vadd.f32 %v228_v11, %v227_v62  ;;  %v350_v51 = vadd.f32 %v349_v13, %v232_v32  ;;  %v248_v12 = vsel %vm247_vm8, %v196_v61, %v189_v10  ;;  %525 = vmatpush3.bf16.msra.mxu0 %v524_v19  ;;  %537 = vmatpush3.bf16.msra.mxu1 %v524_v19  ;;  %vm259_vm1 = vcmask 1047559  }
  0xca   :  { %v210_v20 = vadd.f32 %v209_v16, %v208_v6  ;;  %v222_v22 = vadd.f32 %v221_v17, %v220_v14  ;;  %v234_v0 = vadd.f32 %v233_v18, %v232_v32  ;;  %v250_v27 = vsel %vm249_vm10, %v203_v15, %v248_v12 }
  0xcb   :  { %v217_v26 = vadd.f32 %v216_v5, %v215_v4  ;;  %v230_v2 = vrot.slane %v229_v21, 1 }
  0xcc   :  { %v223_v23 = vrot.slane %v222_v22, 1  ;;  %v235_v24 = vrot.slane %v234_v0, 2  ;;  %v252_v25 = vsel %vm251_vm12, %v210_v20, %v250_v27  ;;  %512 = vmatmul.mubr.msk.f32.vlgmr.msra.gmra.mrb[0].mxu1 %vm261_vm13, %v350_v51 }
  0xcd   :  { %v254_v30 = vsel %vm253_vm14, %v217_v26, %v252_v25  ;;  %v231_v34 = vadd.f32 %v230_v2, %v229_v21 }
  0xce   :  { %v224_v28 = vadd.f32 %v223_v23, %v222_v22  ;;  %v236_v29 = vadd.f32 %v235_v24, %v234_v0 }
  0xd0   :  { %v237_v31 = vrot.slane %v236_v29, 1  ;;  %v256_v33 = vsel %vm255_vm15, %v224_v28, %v254_v30 }
  0xd1   :  { %v258_v35 = vsel %vm257_vm0, %v231_v34, %v256_v33 }
  0xd2   :  { %v238_v9 = vadd.f32 %v237_v31, %v236_v29 }
  0xd4   :  { %v260_v36 = vsel %vm259_vm1, %v238_v9, %v258_v35 }
  0xd5   :  { %493 = vmatmul.mubr.msk.f32.vlgmr.msra.gmra.mrb[0].mxu0 %vm261_vm13, %v260_v36 }
 0x19f   :  { %v421_v38 = vpop.f32.mrb[0].mxu1 }
 0x1a0   :  { %v425_v39 = vadd.f32 %v421_v38, %v351_v37  ;;  %v513_v8 = vpop.f32.mrb[1].mxu1 }
 0x1a2   :  { %426 = vst [vmem:[#allocation6] sm:$0xf] %v425_v39 }
 0x1a3   :  { %595 = shalt.err (!%p592_p12)
}
 0x1a4   :  { %s596_s4 = scalar_lea.hbm %s785_s2, 64 }
 0x1a5   :  { %p597_p13 = scmp.ne.s32.totalorder %s785_s2, %s596_s4  ;;  %p600_p0 = scmp.lt.u32.totalorder %s596_s4, %s785_s2 }
 0x1a7   :  { %p602_p1 = pnand %p600_p0, %p597_p13 }
 0x1a9   :  { %605 = shalt.err (!%p602_p1)
}
 0x1aa   :  { %436 = dma.vmem_to_hbm [thread:$0]  %s434_s27, 64, %s785_s2, [#allocation5]   ;;  %v330_v40 = vpop.f32.mrb[0].mxu0  ;;  %v334_v48 = vld [vmem:[#allocation7] sm:$0x1] }
 0x1ab   :  { %v335_v41 = vmul.f32 %v330_v40, %v330_v40  ;;  %v494_v42 = vpop.f32.mrb[1].mxu0  ;;  %s641_s11 = smov [#allocation7]  }
 0x1ac   :  { %s443_s12 = sshll.u32 %s641_s11, 4  ;;  %s444_s12 = int_to_ptr.vmem [resolvable:$true] %s443_s12 }
 0x1ad   :  { %v336_v43 = vrot.slane %v335_v41, 4  ;;  %s606_s13 = scalar_lea.vmem %s444_s12, 16  ;;  %s610_s14 = scalar_lea.vmem %s444_s12, 32 }
 0x1ae   :  { %p607_p2 = scmp.ne.s32.totalorder %s444_s12, %s606_s13  ;;  %p611_p3 = scmp.lt.s32.totalorder %s444_s12, %s444_s12 }
 0x1af   :  { %v337_v44 = vadd.f32 %v336_v43, %v335_v41  ;;  %p612_p4 = scmp.lt.s32.totalorder %s610_s14, %s606_s13 }
 0x1b1   :  { %v338_v45 = vrot.slane %v337_v44, 2  ;;  %p613_p5 = por %p612_p4, %p611_p3 }
 0x1b3   :  { %v339_v46 = vadd.f32 %v338_v45, %v337_v44  ;;  %p614_p6 = pnand %p613_p5, %p607_p2 }
 0x1b5   :  { %v340_v47 = vrot.slane %v339_v46, 1 }
 0x1b7   :  { %v341_v49 = vadd.f32 %v340_v47, %v339_v46 }
 0x1b9   :  { %v342_v50 = vadd.f32 %v341_v49, %v334_v48 }
 0x1bb   :  { %343 = vst [vmem:[#allocation7] sm:$0x1] %v342_v50 }
 0x1bc   :  { %617 = shalt.err (!%p614_p6)
}
 0x1bd   :  { %s618_s16 = scalar_lea.hbm %s786_s3, 16 }
 0x1be   :  { %p619_p7 = scmp.ne.s32.totalorder %s786_s3, %s618_s16  ;;  %p622_p8 = scmp.lt.u32.totalorder %s618_s16, %s786_s3 }
 0x1c0   :  { %p624_p9 = pnand %p622_p8, %p619_p7 }
 0x1c2   :  { %627 = shalt.err (!%p624_p9)
}
 0x1c3   :  { %446 = dma.vmem_to_hbm [thread:$0]  %s444_s12, 16, %s786_s3, [#allocation8]  }
 0x1c4   :  { %630 = dma.done.wait [#allocation5], 64  }
 0x1c5   :  { %631 = vsyncadd [#allocation5], 4294967232 }
 0x1c6   :  { %632 = dma.done.wait [#allocation8], 16  }
 0x1c7   :  { %633 = vsyncadd [#allocation8], 4294967280 }
 0x1c8   :  { %453 = vsyncpa [#allocation4], 1 }
 0x1c9   :  { %454 = vsyncpa [#allocation5], 1 }
 0x1ca   :  { %455 = vsyncpa [#allocation8], 1 }

</bundles_post_ra>
